<compile_context>
chip_gen: v5e
topology: v5e:2x2
jax: 0.10.0
libtpu: 0.0.40
codegen_flags: <defaults>
</compile_context>

<pallas_src>
import jax
import jax.numpy as jnp
from jax.experimental import pallas as pl
from jax.experimental.pallas import tpu as pltpu


def _embed_kernel(x_ref, w_ref, peb_ref, o_ref):
    # x_ref  : (1, TS, F)   raw input features for this (S-tile, batch) block
    # w_ref  : (2, Ep)      scatter weight rows (zeros outside each segment / pad)
    # peb_ref: (1, TS, Ep)  positional encoding + scattered bias for this S tile
    # o_ref  : (1, TS, Ep)  output block (Ep % 128 == 0 -> unmasked stores)
    x = x_ref[0]                        # (TS, F)
    x0 = x[:, 0:1]                      # (TS, 1)
    x1 = x[:, 1:2]                      # (TS, 1)
    w0 = w_ref[0:1, :]                  # (1, Ep)
    w1 = w_ref[1:2, :]                  # (1, Ep)
    # Pure-VPU: two broadcast FMAs + one add (PE already carries the bias).
    o_ref[0] = x0 * w0 + x1 * w1 + peb_ref[0]


def _round_up(v, m):
    return ((v + m - 1) // m) * m


def _vmem_limit_bytes():
    """Generation-aware VMEM limit: half of physical, capped at 64 MiB.

    v5e/v6e (128 MiB physical) -> 64 MiB; v7x (64 MiB physical) -> 32 MiB.
    """
    try:
        phys = pltpu.get_tpu_info().vmem_capacity_bytes
    except Exception:
        phys = 64 * 1024 * 1024
    return max(16 * 1024 * 1024, min(phys // 2, 64 * 1024 * 1024))


def _pick_ts(S, E_pad, B, vmem_limit, out_tile_target=4 * 1024 * 1024):
    """Pick the seq tile TS (multiple of 8).

    Resident VMEM per pipelined step (double-buffered BlockSpec inputs/outputs):
      2*out(TS,Ep) + 2*peb(TS,Ep) + 2*x(TS, F lane-padded to 128)  [f32]
    plus the small double-buffered weight tile (sublane-padded 2->8, Ep).
    TS is additionally capped so each output tile is ~out_tile_target bytes.
    """
    budget = int(vmem_limit * 0.75)                      # headroom
    w_resident = 2 * 8 * E_pad * 4
    row_bytes = 4 * (2 * E_pad + 2 * E_pad + 2 * 128)
    ts_vmem = max(8, ((budget - w_resident) // row_bytes) // 8 * 8)
    ts_target = max(8, (out_tile_target // (E_pad * 4)) // 8 * 8)
    ts = min(ts_vmem, ts_target, _round_up(S, 8))
    # v7x megacore: keep >= 2 total grid steps when possible.
    if B == 1 and _round_up(S, 8) // ts <= 1 and S > 8:
        ts = max(8, _round_up(_round_up(S, 8) // 2, 8))
    return ts


def pallas_base_embedding(x, w_scat, pe_plus_b):
    """x: (B, S, F) f32; w_scat: (2, E); pe_plus_b: (1, L>=S, E) -> (B, S, E) f32."""
    B, S, F = x.shape
    E = w_scat.shape[1]
    assert pe_plus_b.shape[1] >= S, "positional encoding shorter than sequence"
    peb = pe_plus_b[:, :S, :]                            # slice PE to seq length

    E_pad = _round_up(E, 128)                            # lane-dense output stores
    vmem_limit = _vmem_limit_bytes()
    TS = _pick_ts(S, E_pad, B, vmem_limit)
    S_pad = _round_up(S, TS)                             # cdiv-style ragged handling

    if E_pad != E:
        w_scat = jnp.pad(w_scat, ((0, 0), (0, E_pad - E)))
        peb = jnp.pad(peb, ((0, 0), (0, 0), (0, E_pad - E)))
    if S_pad != S:
        x = jnp.pad(x, ((0, 0), (0, S_pad - S), (0, 0)))
        peb = jnp.pad(peb, ((0, 0), (0, S_pad - S), (0, 0)))

    grid = (S_pad // TS, B)            # batch innermost -> PE tile reused across batch

    out = pl.pallas_call(
        _embed_kernel,
        out_shape=jax.ShapeDtypeStruct((B, S_pad, E_pad), jnp.float32),
        grid_spec=pltpu.PrefetchScalarGridSpec(
            num_scalar_prefetch=0,
            grid=grid,
            in_specs=[
                # full last dim F (satisfies the full-dim exception); slice in-kernel
                pl.BlockSpec((1, TS, F), lambda s, b: (b, s, 0)),
                pl.BlockSpec((2, E_pad), lambda s, b: (0, 0)),
                # PE index_map independent of b -> not re-DMA'd across batch.
                pl.BlockSpec((1, TS, E_pad), lambda s, b: (0, s, 0)),
            ],
            out_specs=pl.BlockSpec((1, TS, E_pad), lambda s, b: (b, s, 0)),
        ),
        compiler_params=pltpu.CompilerParams(
            dimension_semantics=("parallel", "parallel"),
            vmem_limit_bytes=vmem_limit),
    )(x, w_scat, peb)

    if S_pad != S or E_pad != E:
        out = out[:, :S, :E]
    return out


def generate_positional_encoding(embedding_size, sequence_length):
    """Mirror of _generate_positional_encoding (float32, shape (1, L, E))."""
    pe = jnp.zeros((sequence_length, embedding_size), dtype=jnp.float32)
    position = jnp.arange(sequence_length, dtype=jnp.float32)[:, None]
    div_term = jnp.exp(
        jnp.arange(0, embedding_size, 2, dtype=jnp.float32)
        * (-jnp.log(10000.0) / embedding_size))
    pe = pe.at[:, 0::2].set(jnp.sin(position * div_term))
    pe = pe.at[:, 1::2].set(jnp.cos(position * div_term))
    return pe[None]                     # (1, L, E)


def make_packed_params(weights, biases, embedding_dims, pe):
    """Pack the two nn.Linear(1, e_i) layers for the VPU-FMA kernel.

    weights[i]: (e_i, 1), biases[i]: (e_i,)   (PyTorch nn.Linear layout)
    Returns:
      w_scat    (2, E): row i holds W_i in its segment, zeros elsewhere
      pe_plus_b (1, L, E): positional encoding with the scattered bias folded in
    Unwritten columns get zero weight/bias, so they end up equal to PE — exactly
    matching the torch.zeros buffer + PE in the reference forward.
    Note: folding the bias into PE changes f32 summation order vs the reference
    ((x*w + b) + pe vs x*w + (pe+b)); the difference is within 1e-5 tolerance.
    """
    E = sum(embedding_dims)
    w_scat = jnp.zeros((2, E), dtype=jnp.float32)
    b_scat = jnp.zeros((1, E), dtype=jnp.float32)
    start = 0
    for i in range(2):
        e = embedding_dims[i]
        w_scat = w_scat.at[i, start:start + e].set(weights[i][:, 0])
        b_scat = b_scat.at[0, start:start + e].set(biases[i])
        start += e
    pe_plus_b = pe + b_scat[None]       # (1, L, E)
    return w_scat, pe_plus_b


def reference_forward(x, weights, biases, embedding_dims, pe):
    """Pure-JAX reference of the PyTorch forward (src path)."""
    B, S, _ = x.shape
    E = sum(embedding_dims)
    out = jnp.zeros((B, S, E), dtype=jnp.float32)
    start = 0
    for i in range(2):
        e = embedding_dims[i]
        lin = x[:, :, i:i + 1] * weights[i][:, 0][None, None, :] + biases[i]
        out = out.at[:, :, start:start + e].set(lin)
        start += e
    return out + pe[:, :S, :]


if __name__ == "__main__":
    # Small shapes consistent with the module's forward (src path, default
    # sequence_length_src=10). E = 64 deliberately exercises the E->128 lane
    # padding path, and S = 10 exercises the S-padding (cdiv tiling) path.
    embedding_dims = [16, 16, 32]       # size = 64; only first two get linear layers
    E = sum(embedding_dims)
    B, S, F = 2, 10, 4

    key = jax.random.PRNGKey(0)
    kx, kw0, kb0, kw1, kb1 = jax.random.split(key, 5)

    x = jax.random.normal(kx, (B, S, F), dtype=jnp.float32)

    # nn.Linear(1, e_i): weight (e_i, 1), bias (e_i,).
    weights = [
        jax.random.normal(kw0, (embedding_dims[0], 1), dtype=jnp.float32) * 0.5,
        jax.random.normal(kw1, (embedding_dims[1], 1), dtype=jnp.float32) * 0.5,
    ]
    biases = [
        jax.random.normal(kb0, (embedding_dims[0],), dtype=jnp.float32) * 0.1,
        jax.random.normal(kb1, (embedding_dims[1],), dtype=jnp.float32) * 0.1,
    ]

    pe = generate_positional_encoding(E, S)               # (1, S, E) src PE
    w_scat, pe_plus_b = make_packed_params(weights, biases, embedding_dims, pe)

    out = pallas_base_embedding(x, w_scat, pe_plus_b)
    out = jax.block_until_ready(out)

    ref = reference_forward(x, weights, biases, embedding_dims, pe)
    assert out.shape == (B, S, E)
    assert jnp.allclose(out, ref, atol=1e-5, rtol=1e-5), "mismatch vs reference"

    print("KERNEL_OK")
</pallas_src>

<mosaic_0001>
module attributes {stable_mosaic.version = 11 : i64} {
  func.func @_embed_kernel(%arg0: i32, %arg1: i32, %arg2: memref<1x16x4xf32, #tpu.memory_space<vmem>>, %arg3: memref<2x128xf32, #tpu.memory_space<vmem>>, %arg4: memref<1x16x128xf32, #tpu.memory_space<vmem>>, %arg5: memref<1x16x128xf32, #tpu.memory_space<vmem>>) attributes {dimension_semantics = [#tpu.dimension_semantics<parallel>, #tpu.dimension_semantics<parallel>], iteration_bounds = array<i64: 1, 2>, scalar_prefetch = 0 : i64, scratch_operands = 0 : i64, tpu.core_type = #tpu.core_type<tc>, window_params = [{transform_indices = @transform_0, window_bounds = array<i64: 1, 16, 4>}, {pipeline_mode = #tpu.pipeline_mode<synchronous>, transform_indices = @transform_1, window_bounds = array<i64: 2, 128>}, {transform_indices = @transform_2, window_bounds = array<i64: 1, 16, 128>}, {transform_indices = @transform_3, window_bounds = array<i64: 1, 16, 128>}]} {
    %c0 = arith.constant 0 : index
    %c0_0 = arith.constant 0 : index
    %c0_1 = arith.constant 0 : index
    %0 = vector.load %arg2[%c0, %c0_0, %c0_1] : memref<1x16x4xf32, #tpu.memory_space<vmem>>, vector<1x16x4xf32>
    %1 = vector.shape_cast %0 : vector<1x16x4xf32> to vector<16x4xf32>
    %2 = vector.extract_strided_slice %1 {offsets = [0, 0], sizes = [16, 1], strides = [1, 1]} : vector<16x4xf32> to vector<16x1xf32>
    %3 = vector.extract_strided_slice %1 {offsets = [0, 1], sizes = [16, 1], strides = [1, 1]} : vector<16x4xf32> to vector<16x1xf32>
    %c0_2 = arith.constant 0 : index
    %c0_3 = arith.constant 0 : index
    %4 = vector.load %arg3[%c0_2, %c0_3] : memref<2x128xf32, #tpu.memory_space<vmem>>, vector<1x128xf32>
    %c1 = arith.constant 1 : index
    %c0_4 = arith.constant 0 : index
    %5 = vector.load %arg3[%c1, %c0_4] : memref<2x128xf32, #tpu.memory_space<vmem>>, vector<1x128xf32>
    %6 = vector.broadcast %2 : vector<16x1xf32> to vector<16x128xf32>
    %7 = vector.broadcast %4 : vector<1x128xf32> to vector<16x128xf32>
    %8 = arith.mulf %6, %7 : vector<16x128xf32>
    %9 = vector.broadcast %3 : vector<16x1xf32> to vector<16x128xf32>
    %10 = vector.broadcast %5 : vector<1x128xf32> to vector<16x128xf32>
    %11 = arith.mulf %9, %10 : vector<16x128xf32>
    %12 = arith.addf %8, %11 : vector<16x128xf32>
    %c0_5 = arith.constant 0 : index
    %c0_6 = arith.constant 0 : index
    %c0_7 = arith.constant 0 : index
    %13 = vector.load %arg4[%c0_5, %c0_6, %c0_7] : memref<1x16x128xf32, #tpu.memory_space<vmem>>, vector<1x16x128xf32>
    %14 = vector.shape_cast %13 : vector<1x16x128xf32> to vector<16x128xf32>
    %15 = arith.addf %12, %14 : vector<16x128xf32>
    %c0_8 = arith.constant 0 : index
    %c0_9 = arith.constant 0 : index
    %c0_10 = arith.constant 0 : index
    %16 = vector.load %arg5[%c0_8, %c0_9, %c0_10] : memref<1x16x128xf32, #tpu.memory_space<vmem>>, vector<1x16x128xf32>
    %17 = vector.shape_cast %16 : vector<1x16x128xf32> to vector<16x128xf32>
    %18 = vector.shape_cast %15 : vector<16x128xf32> to vector<1x16x128xf32>
    tpu.vector_store %arg5[%c0_8, %c0_9, %c0_10], %18 {strides = array<i32>} : memref<1x16x128xf32, #tpu.memory_space<vmem>>, vector<1x16x128xf32>,
    return
  }
  func.func @transform_0(%arg0: i32, %arg1: i32) -> (i32, i32, i32) {
    %c0_i32 = arith.constant 0 : i32
    %c0_i32_0 = arith.constant 0 : i32
    return %arg1, %arg0, %c0_i32 : i32, i32, i32
  }
  func.func @transform_1(%arg0: i32, %arg1: i32) -> (i32, i32) {
    %c0_i32 = arith.constant 0 : i32
    %c0_i32_0 = arith.constant 0 : i32
    %c0_i32_1 = arith.constant 0 : i32
    return %c0_i32, %c0_i32_0 : i32, i32
  }
  func.func @transform_2(%arg0: i32, %arg1: i32) -> (i32, i32, i32) {
    %c0_i32 = arith.constant 0 : i32
    %c0_i32_0 = arith.constant 0 : i32
    %c0_i32_1 = arith.constant 0 : i32
    return %c0_i32, %arg0, %c0_i32_0 : i32, i32, i32
  }
  func.func @transform_3(%arg0: i32, %arg1: i32) -> (i32, i32, i32) {
    %c0_i32 = arith.constant 0 : i32
    %c0_i32_0 = arith.constant 0 : i32
    return %arg1, %arg0, %c0_i32 : i32, i32, i32
  }
}

</mosaic_0001>

<bundles_post_ra>
// kernel: tpu_custom_call.1
= control target key start
LH: loop header
LB: loop body
LE: loop exit
PB: predicated region body
PF: predicated region fallthrough
CT: control target
= control target key end

     0   :  { %8 = vsyncpa [#allocation3], 0  ;;  %s663_s0 = inlined_call_operand.vmem [shape: f32[2,16,4], index: 0, kind: input, shape index: {}]   ;;  %s664_s1 = inlined_call_operand.vmem [shape: f32[2,128], index: 1, kind: input, shape index: {}]   ;;  %s665_s2 = inlined_call_operand.vmem [shape: f32[1,16,128], index: 2, kind: input, shape index: {}]   ;;  %s666_s3 = inlined_call_operand.hbm [shape: f32[2,16,128], index: 3, kind: output, shape index: {}]  }
   0x1   :  { %10 = vsyncpa [#allocation3 + $0x1], 0  ;;  %s554_s12 = smov 0   ;;  %s556_s13 = smov 0  }
   0x2   :  { %s558_s14 = smov 0   ;;  %s560_s15 = smov 0  }
   0x3   :  { %s562_s16 = smov 0   ;;  %s564_s17 = smov 0  }
   0x4 LB: > { %s370_s18 = sadd.s32 4294967295, %s528_s17   ;;  %s371_s19 = sadd.s32 4294967294, %s528_s17   ;;  %s528_s17 = sphi %s564_s17, %s16_s17   ;;  %s524_s16 = sphi %s562_s16, %s673_s16   ;;  %s520_s15 = sphi %s560_s15, %s672_s15   ;;  %s516_s14 = sphi %s558_s14, %s671_s14   ;;  %s512_s13 = sphi %s556_s13, %s670_s13   ;;  %s508_s12 = sphi %s554_s12, %s669_s12  }
   0x5   : > { %s25_s20 = sadd.s32 1, %s524_s16  ;;  %s112_s21 = sadd.s32 1, %s516_s14 }
   0x6   : > { %p26_p0 = scmp.ge.s32.totalorder %s25_s20, 2  ;;  %p122_p1 = scmp.ne.s32.totalorder %s516_s14, %s512_s13 }
   0x7   : > { %p123_p2 = scmp.eq.s32.totalorder %s370_s18, 1  ;;  %p128_p3 = scmp.ne.s32.totalorder %s512_s13, %s508_s12 }
   0x8   : > { %s675_s20 = smov (%p26_p0, %s25_s20), 0  ;;  %p129_p5 = scmp.eq.s32.totalorder %s371_s19, 1 }
   0x9   : > { %p594_p4 = por %p123_p2, %p122_p1  ;;  %s107_s23 = ssub.s32 %s524_s16, %s675_s20 }
   0xa   : > { %p375_p6 = scmp.ge.s32.totalorder %s528_s17, 1  ;;  %p110_p7 = scmp.eq.s32.totalorder %s107_s23, 0 }
   0xb   : > { %p601_p8 = por %p129_p5, %p128_p3  ;;  %p172_p9 = scmp.lt.s32.totalorder %s528_s17, 3 }
   0xc   : > { %s607_s25 = scalar_select %p110_p7, %s516_s14, %s112_s21  }
   0xd   : > { %p173_p10 = pnand %p375_p6, %p172_p9 }
   0xe   : > { %p206_p11 = scmp.lt.s32.totalorder (!%p173_p10), %s520_s15, 1  ;;  %s202_s8 = sand.u32 (!%p173_p10), 1, %s512_s13  }
   0xf   : > { %176 = sbr.rel (%p173_p10) target bundleno = 158 (0x9e), region = 32  ;;  %s376_s9 = sshll.u32 (!%p173_p10), %s202_s8, 4 }
  0x10   : > { %s385_s18 = sshll.u32 (!%p173_p10), %s520_s15, 4  ;;  %s204_s19 = scalar_lea.vmem (!%p173_p10), [#allocation2], %s376_s9 }
  0x11   : > { %s470_s9 = scalar_lea.hbm (!%p173_p10), %s666_s3, 32 }
  0x14   : > { %v530_v0 = vmov 1   ;;  %v531_v1 = vmov 0   ;;  %s207_s26 = scalar_select %p206_p11, %s520_s15, 1  ;;  %v448_v4 = vld [vmem:[%s664_s1 + $0x1] ss:$0 sm:$0xff]  ;;  %v253_v17 = vld [vmem:[%s665_s2 + $0x8] sm:$0xff] }
  0x15   : > { %446 = vset.pattern.permute.xlu1 %v530_v0  ;;  %445 = vset.pattern.permute.xlu0 %v531_v1  ;;  %v449_v5 = vld [vmem:[%s664_s1] ss:$0 sm:$0xff]  ;;  %s259_s15 = scalar_lea.sflag [#allocation3], %s202_s8 }
  0x16   : > { %s384_s27 = sshll.u32 %s207_s26, 4  ;;  %v252_v10 = vld [vmem:[%s665_s2] sm:$0xff]  ;;  %s272_s26 = scalar_lea.hbm %s666_s3, %s385_s18 }
  0x17   : > { %s213_s30 = scalar_lea.vmem %s663_s0, %s384_s27  ;;  %s273_s27 = sshll.u32 %s204_s19, 4  ;;  %s274_s27 = int_to_ptr.vmem [resolvable:$true] %s273_s27 }
  0x18   : > { %v222_v2 = vld [vmem:[%s213_s30] sm:$0xff]  ;;  %v223_v3 = vld [vmem:[%s213_s30 + $0x8] sm:$0xff]  ;;  %s275_s30 = sshll.u32 %s272_s26, 4  ;;  %s276_s30 = int_to_ptr.hbm [resolvable:$true] %s275_s30 }
  0x19   : > { %240 = vperm.xlu1 %446, %v222_v2   ;;  %228 = vperm.xlu0 %445, %v222_v2   ;;  %s464_s4 = sshra.s32 %s276_s30, 4  ;;  %s465_s4 = int_to_ptr.hbm [resolvable:$true] %s464_s4 }
  0x1a   : > { %s466_s5 = scalar_lea.hbm %s465_s4, 16  ;;  %p471_p1 = scmp.lt.s32.totalorder %s465_s4, %s666_s3 }
  0x1b   : > { %p467_p12 = scmp.ne.s32.totalorder %s465_s4, %s466_s5  ;;  %p472_p2 = scmp.lt.s32.totalorder %s470_s9, %s466_s5 }
  0x1d   : > { %p468_p13 = pnand %p467_p12, %p594_p4  ;;  %p473_p3 = por %p472_p2, %p471_p1 }
  0x1f   : > { %p469_p0 = pneg %p468_p13 }
  0x21   : > { %244 = vperm.xlu1 %446, %v223_v3   ;;  %233 = vperm.xlu0 %445, %v223_v3   ;;  %p474_p5 = pnand %p473_p3, %p469_p0 }
  0x29   : > { %447 = vset.pattern.permute.xlu0 %v530_v0 }
  0x8b   : > { %v241_v6 = vpop.permute.xlu1 %240  ;;  %v229_v7 = vpop.permute.xlu0 %228 }
  0x8c   : > { %v248_v8 = vmul.f32 %v448_v4, %v241_v6  ;;  %v237_v9 = vmul.f32 %v449_v5, %v229_v7 }
  0x8e   : > { %v250_v11 = vadd.f32 %v248_v8, %v237_v9 }
  0x90   : > { %v254_v12 = vadd.f32 %v252_v10, %v250_v11 }
  0x92   : > { %256 = vst [vmem:[%s204_s19] sm:$0xff] %v254_v12 }
  0x93   : > { %v245_v13 = vpop.permute.xlu1 %244  ;;  %v234_v14 = vpop.permute.xlu0 %233 }
  0x94   : > { %v249_v15 = vmul.f32 %v448_v4, %v245_v13  ;;  %v238_v16 = vmul.f32 %v449_v5, %v234_v14 }
  0x96   : > { %v251_v18 = vadd.f32 %v249_v15, %v238_v16 }
  0x98   : > { %v255_v19 = vadd.f32 %v253_v17, %v251_v18 }
  0x9a   : > { %257 = vst [vmem:[%s204_s19 + $0x8] sm:$0xff] %v255_v19 }
  0x9b   : > { %477 = shalt.err (!%p474_p5)
}
  0x9c   : > { %s532_s8 = smov 128   ;;  %s533_s18 = smov 8  }
  0x9d   : > { %386 = dma.vmem_to_hbm [thread:$0]  (%p594_p4), %s274_s27, 256, %s276_s30, %s259_s15, %s532_s8, %s532_s8, %s533_s18  }
  0x9e PF: > { %p392_p6 = scmp.ge.s32.totalorder %s528_s17, 2  ;;  %s290_s19 = sand.u32 1, %s508_s12  }
  0x9f   : > { %s291_s21 = scalar_lea.sflag [#allocation3], %s290_s19 }
  0xa0   : > { %p389_p7 = pnand %p392_p6, %p601_p8 }
  0xa2   : > { %p390_p9 = pneg %p389_p7 }
  0xa4   : > { %503 = dma.done.wait (%p390_p9), %s291_s21, 256  }
  0xa5   : > { %505 = vsyncadd (%p390_p9), %s291_s21, 4294967040  ;;  %s16_s17 = sadd.s32 1, %s528_s17   ;;  %s669_s12 = smov %s512_s13 }
  0xa6   : > { %p13_p10 = scmp.ge.s32.totalorder %s16_s17, 4   ;;  %s670_s13 = smov %s516_s14 }
  0xa7   : > { %s671_s14 = smov %s607_s25  ;;  %s672_s15 = smov %s524_s16 }
  0xa8   : > { %s673_s16 = smov %s675_s20  ;;  %15 = sbr.rel (!%p13_p10) target bundleno = 4 (0x4), region = 70 }
  0xad   :  { %297 = vsyncpa [#allocation3], 1 }
  0xae   :  { %299 = vsyncpa [#allocation3 + $0x1], 1 }

</bundles_post_ra>
